<compile_context>
chip_gen: v7x
topology: tpu7x:2x2x1
jax: 0.10.0
libtpu: 0.0.40
codegen_flags: <defaults>
</compile_context>

<pallas_src>
import jax
import jax.numpy as jnp
from jax.experimental import pallas as pl
from jax.experimental.pallas import tpu as pltpu

EPS = 1e-5  # F.layer_norm default eps


def make_layernorm_kernel(d_true, d_pad):
    """Build a LayerNorm kernel closed over the true/padded feature dims."""
    need_mask = d_pad != d_true
    inv_d = 1.0 / float(d_true)

    def kernel(x_ref, gamma_ref, beta_ref, o_ref):
        # x_ref: (tile_rows, d_pad) in VMEM. All math in f32.
        x = x_ref[...].astype(jnp.float32)
        gamma = gamma_ref[...].astype(jnp.float32)  # (1, d_pad)
        beta = beta_ref[...].astype(jnp.float32)    # (1, d_pad)

        # Pass 1: mean over the true D. Padded lanes are zero, so the plain
        # lane-sum is already correct; just scale by 1/D_true.
        mean = jnp.sum(x, axis=-1, keepdims=True) * jnp.float32(inv_d)

        # Pass 2: biased variance over the already-resident tile (no extra HBM
        # traffic). Padded lanes must be masked since (0 - mean) != 0 there.
        centered = x - mean
        if need_mask:
            lane = jax.lax.broadcasted_iota(jnp.int32, x.shape, dimension=x.ndim - 1)
            centered = jnp.where(lane < d_true, centered, 0.0)
        var = jnp.sum(centered * centered, axis=-1, keepdims=True) * jnp.float32(inv_d)
        inv = jax.lax.rsqrt(var + EPS)  # EUP slot

        # Padded lanes: centered==0 and gamma/beta padded with 0 -> output 0,
        # sliced away in the wrapper.
        y = centered * inv * gamma + beta
        o_ref[...] = y.astype(o_ref.dtype)

    return kernel


def _round_up(x, m):
    return -(-x // m) * m


def _sublane_pack(dtype):
    # Sublane packing: 8 rows for 32-bit, 16 for 16-bit, 32 for 8-bit dtypes.
    itemsize = jnp.dtype(dtype).itemsize
    return 8 * max(1, 4 // itemsize)


def _vmem_capacity_bytes():
    try:
        return int(pltpu.get_tpu_info().vmem_capacity_bytes)
    except Exception:
        pass
    try:
        kind = jax.devices()[0].device_kind.lower()
        # v5e / v5 lite / v6e parts have 128 MiB of VMEM per TensorCore.
        if "v5" in kind or "v6" in kind:
            return 128 << 20
    except Exception:
        pass
    return 64 << 20  # conservative: v7x per-TensorCore capacity


def _pick_tiling(n_rows, d_pad, dtype):
    """Pick (tile_rows, vmem_limit_bytes) for this memory-bound row-wise kernel."""
    pack = _sublane_pack(dtype)
    itemsize = jnp.dtype(dtype).itemsize
    vmem = _vmem_capacity_bytes()

    # Fixed ~1 MiB input-block target: streaming kernels hit ~85% of HBM
    # roofline there; bigger tiles only shrink the grid and inflate VMEM/vreg
    # pressure. Same behaviour on all chip generations.
    target_block_bytes = 1 << 20
    tile_rows = max(pack, (target_block_bytes // max(d_pad * itemsize, 1)) // pack * pack)

    # Keep enough grid steps for pipeline steady state and the v7x 2-TC split:
    # aim for >= 8 steps (>= 4 per TensorCore) whenever the row count allows.
    min_steps = min(8, max(1, -(-n_rows // pack)))
    max_tile_for_steps = _round_up(max(1, -(-n_rows // min_steps)), pack)
    tile_rows = max(pack, min(tile_rows, max_tile_for_steps))

    def working_set(rows):
        io = 2 * 2 * rows * d_pad * itemsize       # (in + out) double-buffered
        f32_tmp = 3 * rows * d_pad * 4             # f32 cast + centered + square
        params = 4 * d_pad * 4                     # gamma/beta (double-buffered)
        return io + f32_tmp + params

    budget = int(vmem * 0.75)  # headroom for compiler scratch (esp. v7x 64 MiB)
    needed = working_set(tile_rows)
    while needed > budget and tile_rows > pack:
        tile_rows = max(pack, (tile_rows // 2) // pack * pack)
        needed = working_set(tile_rows)

    # Scoped VMEM limit: comfortably above the working set (v5e's default
    # scoped limit is only 16 MiB), clamped to ~75% of physical capacity.
    vmem_limit = int(min(budget, max(2 * needed, 32 << 20)))
    return tile_rows, vmem_limit


def _x_block_spec(tile_rows, d_pad, block_bytes, grid):
    """Input BlockSpec; deepen pipelining for tiny blocks on long grids."""
    if block_bytes < (512 << 10) and grid >= 4:
        try:
            return pl.BlockSpec((tile_rows, d_pad), lambda i: (i, 0),
                                pipeline_mode=pl.Buffered(3))
        except TypeError:
            pass  # older jax without pipeline_mode: fall back to default 2-deep
    return pl.BlockSpec((tile_rows, d_pad), lambda i: (i, 0))


def layer_norm(x, gamma, beta):
    orig_shape = x.shape
    d = orig_shape[-1]
    x2 = x.reshape(-1, d)
    n = x2.shape[0]
    dtype = x2.dtype

    # Lane-dense IO: pad the feature dim to a multiple of 128 so loads/stores
    # are unmasked full-lane vectors. Zero padding keeps the row sum exact;
    # the kernel masks the variance pass and we slice the output back.
    d_pad = _round_up(d, 128)
    if d_pad != d:
        x2 = jnp.pad(x2, ((0, 0), (0, d_pad - d)))
        gamma2 = jnp.pad(gamma.reshape(1, d), ((0, 0), (0, d_pad - d)))
        beta2 = jnp.pad(beta.reshape(1, d), ((0, 0), (0, d_pad - d)))
    else:
        gamma2 = gamma.reshape(1, d)
        beta2 = beta.reshape(1, d)

    tile_rows, vmem_limit = _pick_tiling(n, d_pad, dtype)
    grid = pl.cdiv(n, tile_rows)  # ragged tail handled by Pallas masking
    block_bytes = tile_rows * d_pad * jnp.dtype(dtype).itemsize

    out = pl.pallas_call(
        make_layernorm_kernel(d, d_pad),
        out_shape=jax.ShapeDtypeStruct((n, d_pad), dtype),
        grid_spec=pltpu.PrefetchScalarGridSpec(
            num_scalar_prefetch=0,
            grid=(grid,),
            in_specs=[
                _x_block_spec(tile_rows, d_pad, block_bytes, grid),
                pl.BlockSpec((1, d_pad), lambda i: (0, 0)),  # gamma: constant block
                pl.BlockSpec((1, d_pad), lambda i: (0, 0)),  # beta:  constant block
            ],
            out_specs=pl.BlockSpec((tile_rows, d_pad), lambda i: (i, 0)),
        ),
        compiler_params=pltpu.CompilerParams(
            # "parallel" lets v7x's two TensorCores split the row grid.
            dimension_semantics=("parallel",),
            vmem_limit_bytes=vmem_limit,
        ),
    )(x2, gamma2, beta2)

    if d_pad != d:
        out = out[:, :d]
    return out.reshape(orig_shape)


if __name__ == "__main__":
    key = jax.random.PRNGKey(0)
    B, S, D = 2, 8, 32

    x = jax.random.normal(key, (B, S, D), dtype=jnp.float32)

    # nn.Parameter(torch.ones(dim)) and register_buffer('beta', torch.zeros(dim)).
    gamma = jnp.ones((D,), dtype=jnp.float32)
    beta = jnp.zeros((D,), dtype=jnp.float32)

    y = layer_norm(x, gamma, beta)
    y = jax.block_until_ready(y)

    # Reference check in plain JAX (biased variance, eps=1e-5, like torch).
    mean = jnp.mean(x, axis=-1, keepdims=True)
    var = jnp.mean((x - mean) ** 2, axis=-1, keepdims=True)
    ref = (x - mean) / jnp.sqrt(var + EPS) * gamma + beta
    assert jnp.allclose(y, ref, atol=1e-5, rtol=1e-5), "mismatch vs reference"

    print("KERNEL_OK")
</pallas_src>

<mosaic_0001>
module attributes {stable_mosaic.version = 11 : i64} {
  func.func @kernel(%arg0: i32, %arg1: memref<8x128xf32, #tpu.memory_space<vmem>>, %arg2: memref<1x128xf32, #tpu.memory_space<vmem>>, %arg3: memref<1x128xf32, #tpu.memory_space<vmem>>, %arg4: memref<8x128xf32, #tpu.memory_space<vmem>>) attributes {dimension_semantics = [#tpu.dimension_semantics<parallel>], iteration_bounds = array<i64: 2>, scalar_prefetch = 0 : i64, scratch_operands = 0 : i64, tpu.core_type = #tpu.core_type<tc>, window_params = [{transform_indices = @transform_0, window_bounds = array<i64: 8, 128>}, {pipeline_mode = #tpu.pipeline_mode<synchronous>, transform_indices = @transform_1, window_bounds = array<i64: 1, 128>}, {pipeline_mode = #tpu.pipeline_mode<synchronous>, transform_indices = @transform_2, window_bounds = array<i64: 1, 128>}, {transform_indices = @transform_3, window_bounds = array<i64: 8, 128>}]} {
    %c0 = arith.constant 0 : index
    %c0_0 = arith.constant 0 : index
    %0 = vector.load %arg1[%c0, %c0_0] : memref<8x128xf32, #tpu.memory_space<vmem>>, vector<8x128xf32>
    %c0_1 = arith.constant 0 : index
    %c0_2 = arith.constant 0 : index
    %1 = vector.load %arg2[%c0_1, %c0_2] : memref<1x128xf32, #tpu.memory_space<vmem>>, vector<1x128xf32>
    %c0_3 = arith.constant 0 : index
    %c0_4 = arith.constant 0 : index
    %2 = vector.load %arg3[%c0_3, %c0_4] : memref<1x128xf32, #tpu.memory_space<vmem>>, vector<1x128xf32>
    %cst = arith.constant dense<0.000000e+00> : vector<8xf32>
    %3 = vector.multi_reduction <add>, %0, %cst [1] : vector<8x128xf32> to vector<8xf32>
    %4 = vector.shape_cast %3 : vector<8xf32> to vector<8x1xf32>
    %cst_5 = arith.constant 3.125000e-02 : f32
    %5 = vector.broadcast %cst_5 : f32 to vector<8x1xf32>
    %6 = arith.mulf %4, %5 : vector<8x1xf32>
    %7 = vector.broadcast %6 : vector<8x1xf32> to vector<8x128xf32>
    %8 = arith.subf %0, %7 : vector<8x128xf32>
    %9 = tpu.iota {dimensions = array<i32: 1>} : vector<8x128xi32>
    %c32_i32 = arith.constant 32 : i32
    %10 = vector.broadcast %c32_i32 : i32 to vector<8x128xi32>
    %11 = arith.cmpi slt, %9, %10 : vector<8x128xi32>
    %cst_6 = arith.constant 0.000000e+00 : f32
    %12 = vector.broadcast %cst_6 : f32 to vector<8x128xf32>
    %13 = arith.select %11, %8, %12 : vector<8x128xi1>, vector<8x128xf32>
    %14 = arith.mulf %13, %13 : vector<8x128xf32>
    %cst_7 = arith.constant dense<0.000000e+00> : vector<8xf32>
    %15 = vector.multi_reduction <add>, %14, %cst_7 [1] : vector<8x128xf32> to vector<8xf32>
    %16 = vector.shape_cast %15 : vector<8xf32> to vector<8x1xf32>
    %cst_8 = arith.constant 3.125000e-02 : f32
    %17 = vector.broadcast %cst_8 : f32 to vector<8x1xf32>
    %18 = arith.mulf %16, %17 : vector<8x1xf32>
    %cst_9 = arith.constant 9.99999974E-6 : f32
    %19 = vector.broadcast %cst_9 : f32 to vector<8x1xf32>
    %20 = arith.addf %18, %19 : vector<8x1xf32>
    %21 = math.rsqrt %20 : vector<8x1xf32>
    %22 = vector.broadcast %21 : vector<8x1xf32> to vector<8x128xf32>
    %23 = arith.mulf %13, %22 : vector<8x128xf32>
    %24 = vector.broadcast %1 : vector<1x128xf32> to vector<8x128xf32>
    %25 = arith.mulf %23, %24 : vector<8x128xf32>
    %26 = vector.broadcast %2 : vector<1x128xf32> to vector<8x128xf32>
    %27 = arith.addf %25, %26 : vector<8x128xf32>
    %c0_10 = arith.constant 0 : index
    %c0_11 = arith.constant 0 : index
    %28 = vector.load %arg4[%c0_10, %c0_11] : memref<8x128xf32, #tpu.memory_space<vmem>>, vector<8x128xf32>
    tpu.vector_store %arg4[%c0_10, %c0_11], %27 {strides = array<i32>} : memref<8x128xf32, #tpu.memory_space<vmem>>, vector<8x128xf32>,
    return
  }
  func.func @transform_0(%arg0: i32) -> (i32, i32) {
    %c0_i32 = arith.constant 0 : i32
    %c0_i32_0 = arith.constant 0 : i32
    return %arg0, %c0_i32 : i32, i32
  }
  func.func @transform_1(%arg0: i32) -> (i32, i32) {
    %c0_i32 = arith.constant 0 : i32
    %c0_i32_0 = arith.constant 0 : i32
    %c0_i32_1 = arith.constant 0 : i32
    return %c0_i32, %c0_i32_0 : i32, i32
  }
  func.func @transform_2(%arg0: i32) -> (i32, i32) {
    %c0_i32 = arith.constant 0 : i32
    %c0_i32_0 = arith.constant 0 : i32
    %c0_i32_1 = arith.constant 0 : i32
    return %c0_i32, %c0_i32_0 : i32, i32
  }
  func.func @transform_3(%arg0: i32) -> (i32, i32) {
    %c0_i32 = arith.constant 0 : i32
    %c0_i32_0 = arith.constant 0 : i32
    return %arg0, %c0_i32 : i32, i32
  }
}

</mosaic_0001>

<bundles_post_ra>
// kernel: tpu_custom_call.1
= control target key start
LH: loop header
LB: loop body
LE: loop exit
PB: predicated region body
PF: predicated region fallthrough
CT: control target
= control target key end

     0   :  { %8 = vsyncpa [#allocation3], 0  ;;  %s652_s0 = inlined_call_operand.hbm [shape: f32[16,128], index: 0, kind: input, shape index: {}]   ;;  %s653_s1 = inlined_call_operand.vmem [shape: f32[1,128], index: 1, kind: input, shape index: {}]   ;;  %s654_s2 = inlined_call_operand.vmem [shape: f32[1,128], index: 2, kind: input, shape index: {}]   ;;  %s655_s3 = inlined_call_operand.hbm [shape: f32[16,128], index: 3, kind: output, shape index: {}]  }
   0x1   :  { %10 = vsyncpa [#allocation3 + $0x1], 0 }
   0x2   :  { %11 = vsyncpa [#allocation4], 0 }
   0x3   :  { %13 = vsyncpa [#allocation4 + $0x1], 0  ;;  %s485_s12 = smov 0   ;;  %s487_s13 = smov 0  }
   0x4   :  { %s489_s14 = smov 0   ;;  %s491_s15 = smov 0  }
   0x5 LB: > { %s506_s16 = sadd.s32 4294967295, %s461_s15   ;;  %s303_s17 = sadd.s32 4294967294, %s461_s15   ;;  %s461_s15 = sphi %s491_s15, %s670_s15   ;;  %s457_s14 = sphi %s489_s14, %s669_s14   ;;  %s453_s13 = sphi %s487_s13, %s668_s13   ;;  %s449_s12 = sphi %s485_s12, %s667_s12  }
   0x6   : > { %s510_s18 = sadd.s32 1, %s461_s15   ;;  %s26_s19 = sadd.s32 1, %s457_s14 }
   0x7   : > { %s23_s20 = ssub.s32 %s461_s15, %s510_s18  ;;  %p33_p0 = scmp.ne.s32.totalorder %s457_s14, %s453_s13 }
   0x8   : > { %p24_p1 = scmp.eq.s32.totalorder %s23_s20, 0  ;;  %p34_p2 = scmp.eq.s32.totalorder %s461_s15, 0 }
   0x9   : > { %p39_p3 = scmp.ne.s32.totalorder %s453_s13, %s449_s12  ;;  %p40_p4 = scmp.eq.s32.totalorder %s506_s16, 0 }
   0xa   : > { %s522_s21 = scalar_select %p24_p1, %s457_s14, %s26_s19  }
   0xb   : > { %p524_p5 = por %p34_p2, %p33_p0  ;;  %p528_p6 = por %p40_p4, %p39_p3 }
   0xc   : > { %p105_p7 = scmp.eq.s32.totalorder %s506_s16, 1  ;;  %p111_p8 = scmp.eq.s32.totalorder %s303_s17, 1 }
   0xd   : > { %p329_p10 = scmp.lt.s32.totalorder %s461_s15, 2  ;;  %s137_s26 = sand.u32 1, %s457_s14  }
   0xe   : > { %p535_p11 = por %p105_p7, %p33_p0  ;;  %p539_p12 = por %p111_p8, %p39_p3 }
   0xf   : > { %s307_s27 = sshll.u32 %s461_s15, 7  ;;  %s306_s28 = sshll.u32 %s137_s26, 3 }
  0x10   : > { %s659_s24 = scalar_select %p535_p11, 1, 0 }
  0x11   : > { %s660_s25 = scalar_select %p539_p12, 1, 0 }
  0x12   : > { %s548_s4 = scalar_lea.hbm %s652_s0, %s307_s27  ;;  %s141_s5 = scalar_lea.vmem [#allocation2], %s306_s28 }
  0x13   : > { %s148_s6 = sshll.u32 %s141_s5, 4  ;;  %p552_p13 = pnand %p329_p10, %p524_p5  ;;  %s556_s6 = int_to_ptr.vmem [resolvable:$true] %s148_s6 }
  0x14   : > { %s138_s8 = scalar_lea.sflag [#allocation3], %s137_s26  ;;  %s365_s9 = scalar_lea.hbm %s548_s4, 128 }
  0x15   : > { %p366_p2 = scmp.ne.s32.totalorder %s548_s4, %s365_s9  ;;  %p367_p3 = pneg %p552_p13 }
  0x16   : > { %s370_s17 = scalar_lea.hbm %s652_s0, 256  ;;  %p371_p5 = scmp.lt.u32.totalorder %s548_s4, %s652_s0 }
  0x17   : > { %p368_p4 = pnand %p367_p3, %p366_p2  ;;  %p372_p8 = scmp.lt.u32.totalorder %s370_s17, %s365_s9 }
  0x18   : > { %p374_p9 = scmp.lt.u32.totalorder %s365_s9, %s548_s4 }
  0x19   : > { %p369_p7 = pneg %p368_p4  ;;  %p373_p10 = por %p372_p8, %p371_p5 }
  0x1b   : > { %p375_p0 = por %p374_p9, %p373_p10 }
  0x1d   : > { %p376_p1 = pnand %p375_p0, %p369_p7 }
  0x1f   : > { %379 = shalt.err (!%p376_p1)
}
  0x20   : > { %s380_s22 = scalar_lea.vmem %s556_s6, 128  ;;  %s463_s26 = smov [#allocation2]  }
  0x21   : > { %p381_p2 = scmp.ne.s32.totalorder %s556_s6, %s380_s22  ;;  %s385_s27 = sshll.u32 %s463_s26, 4  ;;  %s386_s27 = int_to_ptr.vmem [resolvable:$false] %s385_s27 }
  0x22   : > { %s387_s28 = scalar_lea.vmem %s386_s27, 256  ;;  %p388_p11 = scmp.lt.s32.totalorder %s556_s6, %s386_s27 }
  0x23   : > { %p383_p4 = pnand %p381_p2, %p367_p3  ;;  %p389_p5 = scmp.lt.s32.totalorder %s387_s28, %s380_s22 }
  0x25   : > { %p384_p12 = pneg %p383_p4  ;;  %p390_p8 = por %p389_p5, %p388_p11 }
  0x27   : > { %p391_p9 = pnand %p390_p8, %p384_p12 }
  0x29   : > { %394 = shalt.err (!%p391_p9)
}
  0x2a   : > { %324 = dma.hbm_to_vmem [thread:$0]  (!%p552_p13), %s548_s4, 128, %s556_s6, %s138_s8  }
  0x2b   : > { %p662_p0 = scmp.lt.s32.totalorder %s461_s15, 3  ;;  %p663_p1 = scmp.ge.s32.totalorder %s461_s15, 1 }
  0x2d   : > { %p154_p3 = pnand %p663_p1, %p662_p0 }
  0x2e   : > { %s590_s29 = sand.u32 (!%p154_p3), 1, %s453_s13  }
  0x2f   : > { %157 = sbr.rel (%p154_p3) target bundleno = 382 (0x17e), region = 32  ;;  %s309_s30 = sshll.u32 (!%p154_p3), %s590_s29, 3 }
  0x30   : > { %s160_s5 = scalar_lea.sflag (!%p154_p3), [#allocation3], %s590_s29  ;;  %s163_s9 = scalar_lea.vmem (!%p154_p3), [#allocation2], %s309_s30 }
  0x36   : > { %440 = dma.done.wait (%p528_p6), %s160_s5, 128  }
  0x37   : > { %442 = vsyncadd (%p528_p6), %s160_s5, 4294967168  ;;  %v186_v0 = vld [vmem:[%s163_s9] sm:$0xff]  ;;  %v193_v1 = vlaneseq  ;;  %s314_s8 = sshll.u32 %s506_s16, 7  ;;  %s185_s10 = scalar_lea.vmem [#allocation5], %s309_s30 }
  0x38   : > { %189 = vadd.xlane.f32.xlu0 %v186_v0  ;;  %v311_v12 = vld [vmem:[%s653_s1] ss:$0 sm:$0xff]  ;;  %s233_s11 = sshll.u32 %s185_s10, 4  ;;  %s608_s20 = scalar_lea.hbm %s655_s3, %s314_s8  ;;  %s610_s11 = int_to_ptr.vmem [resolvable:$true] %s233_s11 }
  0x39   : > { %v194_v2 = vand.u32 127, %v193_v1  ;;  %v312_v14 = vld [vmem:[%s654_s2] ss:$0 sm:$0xff]  ;;  %s220_s22 = scalar_lea.sflag [#allocation4], %s590_s29  ;;  %s395_s26 = scalar_lea.vmem %s610_s11, 128 }
  0x3a   : > { %p396_p6 = scmp.ne.s32.totalorder %s610_s11, %s395_s26  ;;  %p664_p11 = scmp.ne.s32.totalorder %s659_s24, 0 }
  0x3b   : > { %vm195_vm0 = vcmp.lt.s32.totalorder %v194_v2, 32  ;;  %s464_s16 = smov [#allocation5]  }
  0x3c   : > { %p397_p12 = pnand %p396_p6, %p664_p11  ;;  %s399_s27 = sshll.u32 %s464_s16, 4  ;;  %s400_s27 = int_to_ptr.vmem [resolvable:$false] %s399_s27 }
  0x3d   : > { %s401_s28 = scalar_lea.vmem %s400_s27, 256  ;;  %p402_p7 = scmp.lt.s32.totalorder %s610_s11, %s400_s27 }
  0x3e   : > { %p398_p13 = pneg %p397_p12  ;;  %p403_p10 = scmp.lt.s32.totalorder %s401_s28, %s395_s26 }
  0x40   : > { %p404_p2 = por %p403_p10, %p402_p7 }
  0x42   : > { %p405_p4 = pnand %p404_p2, %p398_p13 }
  0xc5   : > { %v190_v3 = vpop.xlane.xlu0 %189 }
  0xc6   : > { %v191_v4 = vmul.f32 0.03125, %v190_v3 }
  0xc8   : > { %v192_v5 = vsub.f32 %v186_v0, %v191_v4 }
  0xca   : > { %v196_v6 = vsel %vm195_vm0, %v192_v5, 0.0 }
  0xcb   : > { %v197_v7 = vmul.f32 %v196_v6, %v196_v6 }
  0xcd   : > { %198 = vadd.xlane.f32.xlu0 %v197_v7 }
 0x15a   : > { %v199_v8 = vpop.xlane.xlu0 %198 }
 0x15b   : > { %v200_v9 = vmul.f32 0.03125, %v199_v8 }
 0x15d   : > { %v201_v10 = vadd.f32 1e-05, %v200_v9 }
 0x15f   : > { %363 = vrsqrt.f32 %v201_v10 }
 0x169   : > { %v364_v11 = vpop.eup %363 }
 0x16a   : > { %v203_v13 = vmul.f32 %v364_v11, %v196_v6 }
 0x16c   : > { %v210_v15 = vmul.f32 %v311_v12, %v203_v13 }
 0x16e   : > { %v217_v16 = vadd.f32 %v312_v14, %v210_v15 }
 0x170   : > { %218 = vst [vmem:[%s185_s10] sm:$0xff] %v217_v16 }
 0x171   : > { %408 = shalt.err (!%p405_p4)
}
 0x172   : > { %s409_s29 = scalar_lea.hbm %s608_s20, 128  ;;  %s413_s9 = scalar_lea.hbm %s655_s3, 256 }
 0x173   : > { %p410_p5 = scmp.ne.s32.totalorder %s608_s20, %s409_s29  ;;  %p414_p0 = scmp.lt.u32.totalorder %s608_s20, %s655_s3 }
 0x174   : > { %p415_p1 = scmp.lt.u32.totalorder %s413_s9, %s409_s29  ;;  %p417_p6 = scmp.lt.u32.totalorder %s409_s29, %s608_s20 }
 0x175   : > { %p411_p8 = pnand %p410_p5, %p664_p11 }
 0x176   : > { %p416_p3 = por %p415_p1, %p414_p0 }
 0x177   : > { %p412_p9 = pneg %p411_p8 }
 0x178   : > { %p418_p12 = por %p417_p6, %p416_p3 }
 0x17a   : > { %p419_p13 = pnand %p418_p12, %p412_p9 }
 0x17c   : > { %422 = shalt.err (!%p419_p13)
}
 0x17d   : > { %319 = dma.vmem_to_hbm [thread:$0]  (%p664_p11), %s610_s11, 128, %s608_s20, %s220_s22  }
 0x17e PF: > { %s245_s6 = sand.u32 1, %s449_s12   ;;  %p665_p7 = scmp.ne.s32.totalorder %s660_s25, 0 }
 0x17f   : > { %p666_p10 = scmp.ge.s32.totalorder %s461_s15, 2  ;;  %s246_s7 = scalar_lea.sflag [#allocation4], %s245_s6 }
 0x181   : > { %p326_p2 = pnand %p666_p10, %p665_p7 }
 0x183   : > { %444 = dma.done.wait (!%p326_p2), %s246_s7, 128  }
 0x184   : > { %446 = vsyncadd (!%p326_p2), %s246_s7, 4294967168  ;;  %p16_p4 = scmp.ge.s32.totalorder %s510_s18, 4   ;;  %s667_s12 = smov %s453_s13 }
 0x185   : > { %s668_s13 = smov %s457_s14  ;;  %s669_s14 = smov %s522_s21 }
 0x186   : > { %s670_s15 = smov %s510_s18  ;;  %18 = sbr.rel (!%p16_p4) target bundleno = 5 (0x5), region = 77 }
 0x18d   :  { %251 = vsyncpa [#allocation3], 1 }
 0x18e   :  { %253 = vsyncpa [#allocation3 + $0x1], 1 }
 0x18f   :  { %254 = vsyncpa [#allocation4], 1 }
 0x190   :  { %256 = vsyncpa [#allocation4 + $0x1], 1 }

</bundles_post_ra>
